<compile_context>
chip_gen: v5e
topology: v5e:2x2
jax: 0.10.0
libtpu: 0.0.40
codegen_flags: <defaults>
</compile_context>

<pallas_src>
import jax
import jax.numpy as jnp
from jax.experimental import pallas as pl
from jax.experimental.pallas import tpu as pltpu

# Problem sizes (small, consistent with the module: x_dim = 2n, u_dim = n)
B = 8          # batch
N_Q = 4        # n = number of generalized coordinates
X_DIM = 2 * N_Q
U_DIM = N_Q
HID = 32       # hidden width of the synthetic Lagrangian network L(qqd)

NN = N_Q * N_Q
P_LANES = N_Q + 2 * NN        # 36 lanes: [ W1_q | P_cross | P_qd ]
P_ROW_RHS2 = 0                # rows [0, HID)        : RHS of MXU push #2
P_ROW_W1T = HID               # rows [HID, HID+X_DIM): W1^T (RHS of push #1)
P_ROW_B1 = HID + 8            # row: b1
P_ROW_V = HID + 16            # row: v
P_ROW_M = HID + 24            # row: M.flatten()
P_ROWS = HID + 32             # 64 rows total (every block 8-sublane aligned)

assert N_Q == 4, "closed-form adjugate solve below is specialized to n = 4"


def noncons_lnn_kernel(xu_ref, p_ref, out_ref):
    n = N_Q
    f32 = jnp.float32

    # ---- single packed-parameter load (one DMA), static 8-aligned windows.
    rhs2 = p_ref[P_ROW_RHS2:P_ROW_RHS2 + HID, :].astype(f32)      # (HID, 36)
    w1t = p_ref[P_ROW_W1T:P_ROW_W1T + X_DIM, 0:HID].astype(f32)   # (x_dim, HID)
    b1 = p_ref[P_ROW_B1:P_ROW_B1 + 1, 0:HID].astype(f32)          # (1, HID)
    v = p_ref[P_ROW_V:P_ROW_V + 1, 0:HID].astype(f32)             # (1, HID)
    m_flat = p_ref[P_ROW_M:P_ROW_M + 1, 0:NN].astype(f32)         # (1, n^2)

    xu = xu_ref[...].astype(f32)          # (B, x_dim + u_dim)
    bs = xu.shape[0]
    qqd = xu[:, 0:X_DIM]                  # (B, 2n)
    qd = xu[:, n:X_DIM]                   # (B, n)
    u = xu[:, X_DIM:]                     # (B, u_dim)

    # ---- MXU push #1: network pre-activation only.
    z = jnp.dot(qqd, w1t, preferred_element_type=f32) + b1        # (B, HID)
    s = jnp.tanh(z)
    a1 = v * (1.0 - s * s)                # v * tanh'(z)
    c = -2.0 * s * a1                     # v * tanh''(z)

    # ---- MXU push #2: one (2B, HID) x (HID, n + 2n^2) dot.
    #   rows [0,B)  cols [0,n)          : DL_q                 = a1 @ W1_q
    #   rows [B,2B) cols [n, n+n^2)     : cross Hessian (flat) = c @ P_cross
    #   rows [B,2B) cols [n+n^2, ...)   : DDL_qdqd - M (flat)  = c @ P_qd
    lhs2 = jnp.concatenate([a1, c], axis=0)                       # (2B, HID)
    R = jnp.dot(lhs2, rhs2, preferred_element_type=f32)           # (2B, 36)

    dl_q = R[0:bs, 0:n]                                           # (B, n)
    cc = R[bs:2 * bs, n:n + NN]                                   # (B, n^2)
    a_flat = R[bs:2 * bs, n + NN:n + 2 * NN] + m_flat             # (B, n^2)

    # T_k = sum_j qd_j * d^2L/(dq_j dqd_k)
    T = (qd[:, 0:1] * cc[:, 0:n]
         + qd[:, 1:2] * cc[:, n:2 * n]
         + qd[:, 2:3] * cc[:, 2 * n:3 * n]
         + qd[:, 3:4] * cc[:, 3 * n:4 * n])                       # (B, n)
    rhs = dl_q - T + u                                            # (B, n)

    # ---- closed-form symmetric 4x4 solve qdd = A^{-1} rhs (2x2-minor
    # cofactors: flat dependency graph, single EUP reciprocal + Newton step).
    def col(x, j):
        return x[:, j:j + 1]

    a00 = col(a_flat, 0); a01 = col(a_flat, 1)
    a02 = col(a_flat, 2); a03 = col(a_flat, 3)
    a11 = col(a_flat, 5); a12 = col(a_flat, 6); a13 = col(a_flat, 7)
    a22 = col(a_flat, 10); a23 = col(a_flat, 11)
    a33 = col(a_flat, 15)

    s0 = a00 * a11 - a01 * a01
    s1 = a00 * a12 - a01 * a02
    s2 = a00 * a13 - a01 * a03
    s3 = a01 * a12 - a11 * a02
    s4 = a01 * a13 - a11 * a03
    s5 = a02 * a13 - a12 * a03
    c5 = a22 * a33 - a23 * a23
    c4 = a12 * a33 - a13 * a23
    c3 = a12 * a23 - a13 * a22
    c2 = a02 * a33 - a03 * a23
    c1 = a02 * a23 - a03 * a22
    c0 = s5                      # symmetry: a02*a13 - a03*a12 == s5

    det = s0 * c5 - s1 * c4 + s2 * c3 + s3 * c2 - s4 * c1 + s5 * c0

    # Adjugate (symmetric, so only the upper triangle is computed).
    b00 = a11 * c5 - a12 * c4 + a13 * c3
    b01 = -a01 * c5 + a02 * c4 - a03 * c3
    b02 = a13 * s5 - a23 * s4 + a33 * s3
    b03 = -a12 * s5 + a22 * s4 - a23 * s3
    b11 = a00 * c5 - a02 * c2 + a03 * c1
    b12 = -a03 * s5 + a23 * s2 - a33 * s1
    b13 = a02 * s5 - a22 * s2 + a23 * s1
    b22 = a03 * s4 - a13 * s2 + a33 * s0
    b23 = -a02 * s4 + a12 * s2 - a23 * s0
    b33 = a02 * s3 - a12 * s1 + a22 * s0

    r0 = col(rhs, 0); r1 = col(rhs, 1); r2 = col(rhs, 2); r3 = col(rhs, 3)
    num0 = b00 * r0 + b01 * r1 + b02 * r2 + b03 * r3
    num1 = b01 * r0 + b11 * r1 + b12 * r2 + b13 * r3
    num2 = b02 * r0 + b12 * r1 + b22 * r2 + b23 * r3
    num3 = b03 * r0 + b13 * r1 + b23 * r2 + b33 * r3

    inv0 = pl.reciprocal(det, approx=True)
    inv_det = inv0 * (2.0 - det * inv0)          # one Newton step (~f32 exact)
    qdd = jnp.concatenate([num0, num1, num2, num3], axis=1) * inv_det  # (B, n)

    # ---- output [q_d, q_dd, 0]: static slice stores, no final 3-way concat.
    od = out_ref.dtype
    out_ref[:, 0:n] = qd.astype(od)
    out_ref[:, n:X_DIM] = qdd.astype(od)
    out_ref[:, X_DIM:X_DIM + U_DIM] = jnp.zeros((bs, U_DIM), od)


def pack_params(W1, b1, v, M):
    """Pack all parameters (incl. precomputed Hessian outer-product RHS) into
    one f32 array -> a single DMA into VMEM."""
    n = N_Q
    W1 = W1.astype(jnp.float32)
    w1q = W1[:, :n]                                    # (HID, n)
    w1qd = W1[:, n:]                                   # (HID, n)
    p_cross = (w1q[:, :, None] * w1qd[:, None, :]).reshape(HID, NN)
    p_qd = (w1qd[:, :, None] * w1qd[:, None, :]).reshape(HID, NN)
    rhs2 = jnp.concatenate([w1q, p_cross, p_qd], axis=1)           # (HID, 36)

    params = jnp.zeros((P_ROWS, P_LANES), jnp.float32)
    params = params.at[P_ROW_RHS2:P_ROW_RHS2 + HID, :].set(rhs2)
    params = params.at[P_ROW_W1T:P_ROW_W1T + X_DIM, 0:HID].set(W1.T)
    params = params.at[P_ROW_B1, 0:HID].set(b1.astype(jnp.float32))
    params = params.at[P_ROW_V, 0:HID].set(v.astype(jnp.float32))
    params = params.at[P_ROW_M, 0:NN].set(M.astype(jnp.float32).reshape(-1))
    return params


def noncons_lnn_forward(xu, W1, b1, v, M):
    """Wrapper: parameter packing (glue) + pallas_call."""
    params = pack_params(W1, b1, v, M)
    vmem = lambda: pl.BlockSpec(memory_space=pltpu.MemorySpace.VMEM)
    return pl.pallas_call(
        noncons_lnn_kernel,
        out_shape=jax.ShapeDtypeStruct((xu.shape[0], X_DIM + U_DIM), xu.dtype),
        in_specs=[vmem(), vmem()],
        out_specs=vmem(),
    )(xu, params)


# ---------------- pure-JAX reference (mirrors the PyTorch autograd path) ----
def reference_forward(xu, W1, b1, v, M):
    n = N_Q
    qqd = xu[:, :X_DIM]
    u = xu[:, X_DIM:]

    def L_single(x):
        net = jnp.dot(v, jnp.tanh(W1 @ x + b1))
        quad = 0.5 * x[n:] @ M @ x[n:]
        return net + quad

    J = jax.vmap(jax.grad(L_single))(qqd)                    # (B, x_dim)
    Hs = jax.vmap(jax.hessian(L_single))(qqd)                # (B, x_dim, x_dim)
    DL_q = J[:, :n]
    DDL_qqd = Hs[:, :n, n:]
    DDL_qdqd = Hs[:, n:, n:]
    T = jnp.einsum('ijk,ij->ik', DDL_qqd, qqd[:, n:])
    qdd = jnp.einsum('ijk,ij->ik', jnp.linalg.inv(DDL_qdqd), DL_q - T + u)
    return jnp.concatenate([qqd[:, n:], qdd, jnp.zeros_like(u)], axis=1)


if __name__ == "__main__":
    key = jax.random.PRNGKey(0)
    k_xu, k_w1, k_b1, k_v, k_m = jax.random.split(key, 5)

    xu = jax.random.normal(k_xu, (B, X_DIM + U_DIM), dtype=jnp.float32)

    # Deterministic synthetic parameters of the Lagrangian network.
    W1 = 0.5 * jax.random.normal(k_w1, (HID, X_DIM), dtype=jnp.float32)
    b1 = 0.1 * jax.random.normal(k_b1, (HID,), dtype=jnp.float32)
    v = 0.1 * jax.random.normal(k_v, (HID,), dtype=jnp.float32)   # small -> PD Hessian
    A = jax.random.normal(k_m, (N_Q, N_Q), dtype=jnp.float32)
    M = 1.5 * jnp.eye(N_Q, dtype=jnp.float32) + 0.1 * (A @ A.T)   # symmetric PD

    out = noncons_lnn_forward(xu, W1, b1, v, M)
    out = jax.block_until_ready(out)

    ref = reference_forward(xu, W1, b1, v, M)
    assert out.shape == (B, X_DIM + U_DIM)
    assert bool(jnp.allclose(out, ref, atol=2e-3, rtol=2e-3)), (
        f"mismatch: max abs err = {float(jnp.max(jnp.abs(out - ref)))}"
    )
    print("KERNEL_OK")
</pallas_src>

<mosaic_0001>
module attributes {stable_mosaic.version = 11 : i64} {
  func.func @noncons_lnn_kernel(%arg0: memref<8x12xf32, #tpu.memory_space<vmem>>, %arg1: memref<64x36xf32, #tpu.memory_space<vmem>>, %arg2: memref<8x12xf32, #tpu.memory_space<vmem>>) attributes {dimension_semantics = [], scalar_prefetch = 0 : i64, scratch_operands = 0 : i64, tpu.core_type = #tpu.core_type<tc>} {
    %c0 = arith.constant 0 : index
    %c0_0 = arith.constant 0 : index
    %0 = vector.load %arg1[%c0, %c0_0] : memref<64x36xf32, #tpu.memory_space<vmem>>, vector<32x36xf32>
    %c32 = arith.constant 32 : index
    %c0_1 = arith.constant 0 : index
    %1 = vector.load %arg1[%c32, %c0_1] : memref<64x36xf32, #tpu.memory_space<vmem>>, vector<8x32xf32>
    %c40 = arith.constant 40 : index
    %c0_2 = arith.constant 0 : index
    %2 = vector.load %arg1[%c40, %c0_2] : memref<64x36xf32, #tpu.memory_space<vmem>>, vector<1x32xf32>
    %c48 = arith.constant 48 : index
    %c0_3 = arith.constant 0 : index
    %3 = vector.load %arg1[%c48, %c0_3] : memref<64x36xf32, #tpu.memory_space<vmem>>, vector<1x32xf32>
    %c56 = arith.constant 56 : index
    %c0_4 = arith.constant 0 : index
    %4 = vector.load %arg1[%c56, %c0_4] : memref<64x36xf32, #tpu.memory_space<vmem>>, vector<1x16xf32>
    %c0_5 = arith.constant 0 : index
    %c0_6 = arith.constant 0 : index
    %5 = vector.load %arg0[%c0_5, %c0_6] : memref<8x12xf32, #tpu.memory_space<vmem>>, vector<8x12xf32>
    %6 = vector.extract_strided_slice %5 {offsets = [0, 0], sizes = [8, 8], strides = [1, 1]} : vector<8x12xf32> to vector<8x8xf32>
    %7 = vector.extract_strided_slice %5 {offsets = [0, 4], sizes = [8, 4], strides = [1, 1]} : vector<8x12xf32> to vector<8x4xf32>
    %8 = vector.extract_strided_slice %5 {offsets = [0, 8], sizes = [8, 4], strides = [1, 1]} : vector<8x12xf32> to vector<8x4xf32>
    %cst = arith.constant dense<0.000000e+00> : vector<8x32xf32>
    %9 = tpu.matmul %6, %1, %cst {dimension_numbers = #tpu.dot_dimension_numbers<[1], [0], [0], [1], [0, 0, 1, 1], [], []>} : vector<8x8xf32>, vector<8x32xf32>, vector<8x32xf32> -> vector<8x32xf32>
    %10 = vector.broadcast %2 : vector<1x32xf32> to vector<8x32xf32>
    %11 = arith.addf %9, %10 : vector<8x32xf32>
    %12 = math.tanh %11 : vector<8x32xf32>
    %13 = arith.mulf %12, %12 : vector<8x32xf32>
    %cst_7 = arith.constant 1.000000e+00 : f32
    %14 = vector.broadcast %cst_7 : f32 to vector<8x32xf32>
    %15 = arith.subf %14, %13 : vector<8x32xf32>
    %16 = vector.broadcast %3 : vector<1x32xf32> to vector<8x32xf32>
    %17 = arith.mulf %16, %15 : vector<8x32xf32>
    %cst_8 = arith.constant -2.000000e+00 : f32
    %18 = vector.broadcast %cst_8 : f32 to vector<8x32xf32>
    %19 = arith.mulf %18, %12 : vector<8x32xf32>
    %20 = arith.mulf %19, %17 : vector<8x32xf32>
    %21 = tpu.concatenate %17, %20 in 0 : vector<8x32xf32>, vector<8x32xf32> -> vector<16x32xf32>
    %cst_9 = arith.constant dense<0.000000e+00> : vector<16x36xf32>
    %22 = tpu.matmul %21, %0, %cst_9 {dimension_numbers = #tpu.dot_dimension_numbers<[1], [0], [0], [1], [0, 0, 1, 1], [], []>} : vector<16x32xf32>, vector<32x36xf32>, vector<16x36xf32> -> vector<16x36xf32>
    %23 = vector.extract_strided_slice %22 {offsets = [0, 0], sizes = [8, 4], strides = [1, 1]} : vector<16x36xf32> to vector<8x4xf32>
    %24 = vector.extract_strided_slice %22 {offsets = [8, 4], sizes = [8, 16], strides = [1, 1]} : vector<16x36xf32> to vector<8x16xf32>
    %25 = vector.extract_strided_slice %22 {offsets = [8, 20], sizes = [8, 16], strides = [1, 1]} : vector<16x36xf32> to vector<8x16xf32>
    %26 = vector.broadcast %4 : vector<1x16xf32> to vector<8x16xf32>
    %27 = arith.addf %25, %26 : vector<8x16xf32>
    %28 = vector.extract_strided_slice %7 {offsets = [0, 0], sizes = [8, 1], strides = [1, 1]} : vector<8x4xf32> to vector<8x1xf32>
    %29 = vector.extract_strided_slice %24 {offsets = [0, 0], sizes = [8, 4], strides = [1, 1]} : vector<8x16xf32> to vector<8x4xf32>
    %30 = vector.broadcast %28 : vector<8x1xf32> to vector<8x4xf32>
    %31 = arith.mulf %30, %29 : vector<8x4xf32>
    %32 = vector.extract_strided_slice %7 {offsets = [0, 1], sizes = [8, 1], strides = [1, 1]} : vector<8x4xf32> to vector<8x1xf32>
    %33 = vector.extract_strided_slice %24 {offsets = [0, 4], sizes = [8, 4], strides = [1, 1]} : vector<8x16xf32> to vector<8x4xf32>
    %34 = vector.broadcast %32 : vector<8x1xf32> to vector<8x4xf32>
    %35 = arith.mulf %34, %33 : vector<8x4xf32>
    %36 = arith.addf %31, %35 : vector<8x4xf32>
    %37 = vector.extract_strided_slice %7 {offsets = [0, 2], sizes = [8, 1], strides = [1, 1]} : vector<8x4xf32> to vector<8x1xf32>
    %38 = vector.extract_strided_slice %24 {offsets = [0, 8], sizes = [8, 4], strides = [1, 1]} : vector<8x16xf32> to vector<8x4xf32>
    %39 = vector.broadcast %37 : vector<8x1xf32> to vector<8x4xf32>
    %40 = arith.mulf %39, %38 : vector<8x4xf32>
    %41 = arith.addf %36, %40 : vector<8x4xf32>
    %42 = vector.extract_strided_slice %7 {offsets = [0, 3], sizes = [8, 1], strides = [1, 1]} : vector<8x4xf32> to vector<8x1xf32>
    %43 = vector.extract_strided_slice %24 {offsets = [0, 12], sizes = [8, 4], strides = [1, 1]} : vector<8x16xf32> to vector<8x4xf32>
    %44 = vector.broadcast %42 : vector<8x1xf32> to vector<8x4xf32>
    %45 = arith.mulf %44, %43 : vector<8x4xf32>
    %46 = arith.addf %41, %45 : vector<8x4xf32>
    %47 = arith.subf %23, %46 : vector<8x4xf32>
    %48 = arith.addf %47, %8 : vector<8x4xf32>
    %49 = vector.extract_strided_slice %27 {offsets = [0, 0], sizes = [8, 1], strides = [1, 1]} : vector<8x16xf32> to vector<8x1xf32>
    %50 = vector.extract_strided_slice %27 {offsets = [0, 1], sizes = [8, 1], strides = [1, 1]} : vector<8x16xf32> to vector<8x1xf32>
    %51 = vector.extract_strided_slice %27 {offsets = [0, 2], sizes = [8, 1], strides = [1, 1]} : vector<8x16xf32> to vector<8x1xf32>
    %52 = vector.extract_strided_slice %27 {offsets = [0, 3], sizes = [8, 1], strides = [1, 1]} : vector<8x16xf32> to vector<8x1xf32>
    %53 = vector.extract_strided_slice %27 {offsets = [0, 5], sizes = [8, 1], strides = [1, 1]} : vector<8x16xf32> to vector<8x1xf32>
    %54 = vector.extract_strided_slice %27 {offsets = [0, 6], sizes = [8, 1], strides = [1, 1]} : vector<8x16xf32> to vector<8x1xf32>
    %55 = vector.extract_strided_slice %27 {offsets = [0, 7], sizes = [8, 1], strides = [1, 1]} : vector<8x16xf32> to vector<8x1xf32>
    %56 = vector.extract_strided_slice %27 {offsets = [0, 10], sizes = [8, 1], strides = [1, 1]} : vector<8x16xf32> to vector<8x1xf32>
    %57 = vector.extract_strided_slice %27 {offsets = [0, 11], sizes = [8, 1], strides = [1, 1]} : vector<8x16xf32> to vector<8x1xf32>
    %58 = vector.extract_strided_slice %27 {offsets = [0, 15], sizes = [8, 1], strides = [1, 1]} : vector<8x16xf32> to vector<8x1xf32>
    %59 = arith.mulf %49, %53 : vector<8x1xf32>
    %60 = arith.mulf %50, %50 : vector<8x1xf32>
    %61 = arith.subf %59, %60 : vector<8x1xf32>
    %62 = arith.mulf %49, %54 : vector<8x1xf32>
    %63 = arith.mulf %50, %51 : vector<8x1xf32>
    %64 = arith.subf %62, %63 : vector<8x1xf32>
    %65 = arith.mulf %49, %55 : vector<8x1xf32>
    %66 = arith.mulf %50, %52 : vector<8x1xf32>
    %67 = arith.subf %65, %66 : vector<8x1xf32>
    %68 = arith.mulf %50, %54 : vector<8x1xf32>
    %69 = arith.mulf %53, %51 : vector<8x1xf32>
    %70 = arith.subf %68, %69 : vector<8x1xf32>
    %71 = arith.mulf %50, %55 : vector<8x1xf32>
    %72 = arith.mulf %53, %52 : vector<8x1xf32>
    %73 = arith.subf %71, %72 : vector<8x1xf32>
    %74 = arith.mulf %51, %55 : vector<8x1xf32>
    %75 = arith.mulf %54, %52 : vector<8x1xf32>
    %76 = arith.subf %74, %75 : vector<8x1xf32>
    %77 = arith.mulf %56, %58 : vector<8x1xf32>
    %78 = arith.mulf %57, %57 : vector<8x1xf32>
    %79 = arith.subf %77, %78 : vector<8x1xf32>
    %80 = arith.mulf %54, %58 : vector<8x1xf32>
    %81 = arith.mulf %55, %57 : vector<8x1xf32>
    %82 = arith.subf %80, %81 : vector<8x1xf32>
    %83 = arith.mulf %54, %57 : vector<8x1xf32>
    %84 = arith.mulf %55, %56 : vector<8x1xf32>
    %85 = arith.subf %83, %84 : vector<8x1xf32>
    %86 = arith.mulf %51, %58 : vector<8x1xf32>
    %87 = arith.mulf %52, %57 : vector<8x1xf32>
    %88 = arith.subf %86, %87 : vector<8x1xf32>
    %89 = arith.mulf %51, %57 : vector<8x1xf32>
    %90 = arith.mulf %52, %56 : vector<8x1xf32>
    %91 = arith.subf %89, %90 : vector<8x1xf32>
    %92 = arith.mulf %61, %79 : vector<8x1xf32>
    %93 = arith.mulf %64, %82 : vector<8x1xf32>
    %94 = arith.subf %92, %93 : vector<8x1xf32>
    %95 = arith.mulf %67, %85 : vector<8x1xf32>
    %96 = arith.addf %94, %95 : vector<8x1xf32>
    %97 = arith.mulf %70, %88 : vector<8x1xf32>
    %98 = arith.addf %96, %97 : vector<8x1xf32>
    %99 = arith.mulf %73, %91 : vector<8x1xf32>
    %100 = arith.subf %98, %99 : vector<8x1xf32>
    %101 = arith.mulf %76, %76 : vector<8x1xf32>
    %102 = arith.addf %100, %101 : vector<8x1xf32>
    %103 = arith.mulf %53, %79 : vector<8x1xf32>
    %104 = arith.mulf %54, %82 : vector<8x1xf32>
    %105 = arith.subf %103, %104 : vector<8x1xf32>
    %106 = arith.mulf %55, %85 : vector<8x1xf32>
    %107 = arith.addf %105, %106 : vector<8x1xf32>
    %cst_10 = arith.constant 0.000000e+00 : f32
    %108 = vector.broadcast %cst_10 : f32 to vector<8x1xf32>
    %109 = arith.subf %108, %50 : vector<8x1xf32>
    %110 = arith.mulf %109, %79 : vector<8x1xf32>
    %111 = arith.mulf %51, %82 : vector<8x1xf32>
    %112 = arith.addf %110, %111 : vector<8x1xf32>
    %113 = arith.mulf %52, %85 : vector<8x1xf32>
    %114 = arith.subf %112, %113 : vector<8x1xf32>
    %115 = arith.mulf %55, %76 : vector<8x1xf32>
    %116 = arith.mulf %57, %73 : vector<8x1xf32>
    %117 = arith.subf %115, %116 : vector<8x1xf32>
    %118 = arith.mulf %58, %70 : vector<8x1xf32>
    %119 = arith.addf %117, %118 : vector<8x1xf32>
    %cst_11 = arith.constant 0.000000e+00 : f32
    %120 = vector.broadcast %cst_11 : f32 to vector<8x1xf32>
    %121 = arith.subf %120, %54 : vector<8x1xf32>
    %122 = arith.mulf %121, %76 : vector<8x1xf32>
    %123 = arith.mulf %56, %73 : vector<8x1xf32>
    %124 = arith.addf %122, %123 : vector<8x1xf32>
    %125 = arith.mulf %57, %70 : vector<8x1xf32>
    %126 = arith.subf %124, %125 : vector<8x1xf32>
    %127 = arith.mulf %49, %79 : vector<8x1xf32>
    %128 = arith.mulf %51, %88 : vector<8x1xf32>
    %129 = arith.subf %127, %128 : vector<8x1xf32>
    %130 = arith.mulf %52, %91 : vector<8x1xf32>
    %131 = arith.addf %129, %130 : vector<8x1xf32>
    %cst_12 = arith.constant 0.000000e+00 : f32
    %132 = vector.broadcast %cst_12 : f32 to vector<8x1xf32>
    %133 = arith.subf %132, %52 : vector<8x1xf32>
    %134 = arith.mulf %133, %76 : vector<8x1xf32>
    %135 = arith.mulf %57, %67 : vector<8x1xf32>
    %136 = arith.addf %134, %135 : vector<8x1xf32>
    %137 = arith.mulf %58, %64 : vector<8x1xf32>
    %138 = arith.subf %136, %137 : vector<8x1xf32>
    %139 = arith.mulf %51, %76 : vector<8x1xf32>
    %140 = arith.mulf %56, %67 : vector<8x1xf32>
    %141 = arith.subf %139, %140 : vector<8x1xf32>
    %142 = arith.mulf %57, %64 : vector<8x1xf32>
    %143 = arith.addf %141, %142 : vector<8x1xf32>
    %144 = arith.mulf %52, %73 : vector<8x1xf32>
    %145 = arith.mulf %55, %67 : vector<8x1xf32>
    %146 = arith.subf %144, %145 : vector<8x1xf32>
    %147 = arith.mulf %58, %61 : vector<8x1xf32>
    %148 = arith.addf %146, %147 : vector<8x1xf32>
    %cst_13 = arith.constant 0.000000e+00 : f32
    %149 = vector.broadcast %cst_13 : f32 to vector<8x1xf32>
    %150 = arith.subf %149, %51 : vector<8x1xf32>
    %151 = arith.mulf %150, %73 : vector<8x1xf32>
    %152 = arith.mulf %54, %67 : vector<8x1xf32>
    %153 = arith.addf %151, %152 : vector<8x1xf32>
    %154 = arith.mulf %57, %61 : vector<8x1xf32>
    %155 = arith.subf %153, %154 : vector<8x1xf32>
    %156 = arith.mulf %51, %70 : vector<8x1xf32>
    %157 = arith.mulf %54, %64 : vector<8x1xf32>
    %158 = arith.subf %156, %157 : vector<8x1xf32>
    %159 = arith.mulf %56, %61 : vector<8x1xf32>
    %160 = arith.addf %158, %159 : vector<8x1xf32>
    %161 = vector.extract_strided_slice %48 {offsets = [0, 0], sizes = [8, 1], strides = [1, 1]} : vector<8x4xf32> to vector<8x1xf32>
    %162 = vector.extract_strided_slice %48 {offsets = [0, 1], sizes = [8, 1], strides = [1, 1]} : vector<8x4xf32> to vector<8x1xf32>
    %163 = vector.extract_strided_slice %48 {offsets = [0, 2], sizes = [8, 1], strides = [1, 1]} : vector<8x4xf32> to vector<8x1xf32>
    %164 = vector.extract_strided_slice %48 {offsets = [0, 3], sizes = [8, 1], strides = [1, 1]} : vector<8x4xf32> to vector<8x1xf32>
    %165 = arith.mulf %107, %161 : vector<8x1xf32>
    %166 = arith.mulf %114, %162 : vector<8x1xf32>
    %167 = arith.addf %165, %166 : vector<8x1xf32>
    %168 = arith.mulf %119, %163 : vector<8x1xf32>
    %169 = arith.addf %167, %168 : vector<8x1xf32>
    %170 = arith.mulf %126, %164 : vector<8x1xf32>
    %171 = arith.addf %169, %170 : vector<8x1xf32>
    %172 = arith.mulf %114, %161 : vector<8x1xf32>
    %173 = arith.mulf %131, %162 : vector<8x1xf32>
    %174 = arith.addf %172, %173 : vector<8x1xf32>
    %175 = arith.mulf %138, %163 : vector<8x1xf32>
    %176 = arith.addf %174, %175 : vector<8x1xf32>
    %177 = arith.mulf %143, %164 : vector<8x1xf32>
    %178 = arith.addf %176, %177 : vector<8x1xf32>
    %179 = arith.mulf %119, %161 : vector<8x1xf32>
    %180 = arith.mulf %138, %162 : vector<8x1xf32>
    %181 = arith.addf %179, %180 : vector<8x1xf32>
    %182 = arith.mulf %148, %163 : vector<8x1xf32>
    %183 = arith.addf %181, %182 : vector<8x1xf32>
    %184 = arith.mulf %155, %164 : vector<8x1xf32>
    %185 = arith.addf %183, %184 : vector<8x1xf32>
    %186 = arith.mulf %126, %161 : vector<8x1xf32>
    %187 = arith.mulf %143, %162 : vector<8x1xf32>
    %188 = arith.addf %186, %187 : vector<8x1xf32>
    %189 = arith.mulf %155, %163 : vector<8x1xf32>
    %190 = arith.addf %188, %189 : vector<8x1xf32>
    %191 = arith.mulf %160, %164 : vector<8x1xf32>
    %192 = arith.addf %190, %191 : vector<8x1xf32>
    %193 = tpu.reciprocal %102 {approx = true} : vector<8x1xf32> -> vector<8x1xf32>
    %194 = arith.mulf %102, %193 : vector<8x1xf32>
    %cst_14 = arith.constant 2.000000e+00 : f32
    %195 = vector.broadcast %cst_14 : f32 to vector<8x1xf32>
    %196 = arith.subf %195, %194 : vector<8x1xf32>
    %197 = arith.mulf %193, %196 : vector<8x1xf32>
    %198 = tpu.concatenate %171, %178, %185, %192 in 1 : vector<8x1xf32>, vector<8x1xf32>, vector<8x1xf32>, vector<8x1xf32> -> vector<8x4xf32>
    %199 = vector.broadcast %197 : vector<8x1xf32> to vector<8x4xf32>
    %200 = arith.mulf %198, %199 : vector<8x4xf32>
    %c0_15 = arith.constant 0 : index
    %c0_16 = arith.constant 0 : index
    %201 = vector.load %arg2[%c0_15, %c0_16] : memref<8x12xf32, #tpu.memory_space<vmem>>, vector<8x4xf32>
    tpu.vector_store %arg2[%c0_15, %c0_16], %7 {strides = array<i32>} : memref<8x12xf32, #tpu.memory_space<vmem>>, vector<8x4xf32>,
    %c0_17 = arith.constant 0 : index
    %c4 = arith.constant 4 : index
    %202 = vector.load %arg2[%c0_17, %c4] : memref<8x12xf32, #tpu.memory_space<vmem>>, vector<8x4xf32>
    tpu.vector_store %arg2[%c0_17, %c4], %200 {strides = array<i32>} : memref<8x12xf32, #tpu.memory_space<vmem>>, vector<8x4xf32>,
    %cst_18 = arith.constant 0.000000e+00 : f32
    %203 = vector.broadcast %cst_18 : f32 to vector<8x4xf32>
    %c0_19 = arith.constant 0 : index
    %c8 = arith.constant 8 : index
    %204 = vector.load %arg2[%c0_19, %c8] : memref<8x12xf32, #tpu.memory_space<vmem>>, vector<8x4xf32>
    tpu.vector_store %arg2[%c0_19, %c8], %203 {strides = array<i32>} : memref<8x12xf32, #tpu.memory_space<vmem>>, vector<8x4xf32>,
    return
  }
}

</mosaic_0001>

<bundles_post_ra>
// kernel: tpu_custom_call.1
= control target key start
LH: loop header
LB: loop body
LE: loop exit
PB: predicated region body
PF: predicated region fallthrough
CT: control target
= control target key end

     0   :  { %vm22_vm0 = vcmask 64512   ;;  %s1070_s0 = inlined_call_operand.vmem [shape: f32[8,12], index: 0, kind: input, shape index: {}]   ;;  %s1071_s1 = inlined_call_operand.vmem [shape: f32[64,36], index: 1, kind: input, shape index: {}]   ;;  %s1072_s2 = inlined_call_operand.hbm [shape: f32[8,12], index: 2, kind: output, shape index: {}]  }
   0x1   :  { %v16_v0 = vld [vmem:[%s1071_s1 + $0x20] sm:$0xff] }
   0x2   :  { %v794_v1 = vld [vmem:[%s1070_s0] sm:$0xff]  ;;  %41 = vmatpush.msra.mxu0 %v16_v0 }
   0x3   :  { %643 = vmatmul.msk.f32.vlgmr.msra.gmra.mxu0 %vm22_vm0, %v794_v1 }
   0x4   :  { %7 = vsyncpa [#allocation3], 0  ;;  %v15_v2 = vld [vmem:[%s1071_s1 + $0x18] sm:$0xff]  ;;  %v14_v3 = vld [vmem:[%s1071_s1 + $0x10] sm:$0xff]  ;;  %v731_v7 = vmov 5   ;;  %v732_v8 = vmov 4  }
   0x5   :  { %72 = vmatpush.msra.mxu1 %v15_v2  ;;  %646 = vmatpush.msra.mxu2 %v15_v2  ;;  %v13_v4 = vld [vmem:[%s1071_s1 + $0x8] sm:$0xff]  ;;  %v12_v5 = vld [vmem:[%s1071_s1] sm:$0xff]  ;;  %v700_v6 = vld [vmem:[%s1071_s1 + $0x38] ss:$0 sm:$0xff]  ;;  %s733_s22 = smov 20   ;;  %v734_v9 = vmov 6  }
   0x6   :  { %693 = vset.pattern.permute.xlu1 %v731_v7  ;;  %692 = vset.pattern.permute.xlu0 %v732_v8  ;;  %v735_v10 = vmov 7   ;;  %v698_v11 = vld [vmem:[%s1071_s1 + $0x28] ss:$0 sm:$0xff]  ;;  %v699_v16 = vld [vmem:[%s1071_s1 + $0x30] ss:$0 sm:$0xff]  ;;  %vm53_vm1 = vcmask 261120  }
   0x7   :  { %73 = vmatpush.msra.mxu1 %v14_v3  ;;  %647 = vmatpush.msra.mxu2 %v14_v3  ;;  %s736_s27 = smov 120   ;;  %s737_s1 = smov 124   ;;  %vm617_vm2 = vcmask 31744   ;;  %vm602_vm3 = vcmask 7168   ;;  %vm604_vm4 = vcmask 15360   ;;  %vm606_vm5 = vcmask 23552  }
   0x8   :  { %95 = vperm.xlu1 %693, %v794_v1   ;;  %85 = vrot.lane.b32.xlu0 %v700_v6, %s733_s22  ;;  %s738_s28 = smov 126   ;;  %s739_s29 = smov 116   ;;  %vm623_vm6 = vcmask 64544   ;;  %vm625_vm7 = vcmask 97344  }
   0x9   :  { %74 = vmatpush.msra.mxu1 %v13_v4  ;;  %648 = vmatpush.msra.mxu2 %v13_v4  ;;  %s740_s30 = smov 122   ;;  %s741_s3 = smov 125  }
   0xa   :  { %694 = vset.pattern.permute.xlu2 %v734_v9  ;;  %s742_s4 = smov 121   ;;  %s743_s5 = smov 123  }
   0xb   :  { %75 = vmatpush.msra.mxu1 %v12_v5  ;;  %649 = vmatpush.msra.mxu2 %v12_v5  ;;  %s744_s6 = smov 115   ;;  %s745_s7 = smov 127  }
   0xc   :  { %105 = vperm.xlu2 %694, %v794_v1   ;;  %s746_s8 = smov 119   ;;  %s747_s9 = smov 2  }
   0xd   :  { %s748_s10 = smov 3   ;;  %s749_s11 = smov 118  }
   0xe   :  { %s750_s12 = smov 11   ;;  %s751_s13 = smov 15  }
   0xf   :  { %s752_s14 = smov 10   ;;  %s753_s15 = smov 14  }
  0x10   :  { %695 = vset.pattern.permute.xlu1 %v735_v10  ;;  %90 = vperm.xlu0 %692, %v794_v1   ;;  %s754_s16 = smov 6   ;;  %s755_s17 = smov 1  }
  0x11   :  { %115 = vperm.xlu1 %695, %v794_v1   ;;  %s756_s18 = smov 19   ;;  %s757_s0 = smov 9  }
  0x12   :  { %s758_s19 = smov 7   ;;  %s759_s20 = smov 25  }
  0x13   :  { %s760_s21 = smov 5   ;;  %s761_s23 = smov 4  }
  0x14   :  { %s762_s24 = smov 22   ;;  %s764_s25 = smov 23  }
  0x15   :  { %s765_s26 = smov 27  }
  0x19   :  { %129 = vrot.lane.b32.xlu1 %v794_v1, %s736_s27 }
  0x66   :  { %v106_v22 = vpop.permute.xlu2 %105 }
  0x7a   :  { %v96_v21 = vpop.permute.xlu1 %95  ;;  %v86_v23 = vpop.permute.xlu0 %85 }
  0x80   :  { %v43_v12 = vpop.f32.mrf.mxu0 }
  0x81   :  { %v44_v13 = vadd.f32 %v698_v11, %v43_v12 }
  0x82   :  { %v91_v35 = vpop.permute.xlu0 %90 }
  0x83   :  { %701 = vtanh.f32 %v44_v13  ;;  %v116_v28 = vpop.permute.xlu1 %115 }
  0x89   :  { %v702_v14 = vpop.eup %701 }
  0x8a   :  { %v47_v15 = vmul.f32 %v702_v14, %v702_v14  ;;  %v51_v19 = vmul.f32 -2.0, %v702_v14 }
  0x8b   :  { %v854_v33 = vpop.permute.xlu1 %129 }
  0x8c   :  { %v48_v17 = vsub.f32 1.0, %v47_v15 }
  0x8e   :  { %v50_v18 = vmul.f32 %v699_v16, %v48_v17 }
  0x90   :  { %644 = vmatmul.msk.f32.vlgmr.msra.gmra.mxu1 %vm53_vm1, %v50_v18  ;;  %v52_v20 = vmul.f32 %v51_v19, %v50_v18 }
  0x92   :  { %645 = vmatmul.msk.f32.vlgmr.msra.gmra.mxu2 %vm53_vm1, %v52_v20 }
 0x10d   :  { %v77_v19 = vpop.f32.mrf.mxu1 }
 0x115   :  { %v80_v24 = vpop.f32.mrf.mxu2 }
 0x116   :  { %v825_v25 = vadd.f32 %v86_v23, %v80_v24  ;;  %v108_v26 = vmul.f32 %v106_v22, %v80_v24  ;;  %v98_v27 = vmul.f32 %v96_v21, %v80_v24  ;;  %v118_v29 = vmul.f32 %v116_v28, %v80_v24 }
 0x117   :  { %v93_v36 = vmul.f32 %v91_v35, %v80_v24 }
 0x118   :  { %110 = vrot.lane.b32.xlu2 %v108_v26, %s736_s27  ;;  %100 = vrot.lane.b32.xlu1 %v98_v27, %s737_s1  ;;  %v138_v30 = vmul.f32 %v825_v25, %v825_v25 }
 0x119   :  { %161 = vrot.lane.b32.xlu0 %v825_v25, %s738_s28 }
 0x120   :  { %120 = vrot.lane.b32.xlu2 %v118_v29, %s739_s29  ;;  %144 = vrot.lane.b32.xlu1 %v825_v25, %s740_s30 }
 0x121   :  { %201 = vrot.lane.b32.xlu0 %v825_v25, %s741_s3 }
 0x128   :  { %157 = vrot.lane.b32.xlu1 %v825_v25, %s742_s4  ;;  %134 = vrot.lane.b32.xlu2 %v825_v25, %s743_s5 }
 0x129   :  { %210 = vrot.lane.b32.xlu0 %v825_v25, %s744_s6  ;;  %s634_s6 = sshll.u32 %s1072_s2, 4  ;;  %s635_s6 = int_to_ptr.hbm [resolvable:$true] %s634_s6 }
 0x130   :  { %148 = vrot.lane.b32.xlu1 %v825_v25, %s745_s7  ;;  %192 = vrot.lane.b32.xlu2 %v825_v25, %s737_s1 }
 0x131   :  { %140 = vrot.lane.b32.xlu0 %v138_v30, %s745_s7 }
 0x138   :  { %188 = vrot.lane.b32.xlu1 %v825_v25, %s746_s8  ;;  %179 = vrot.lane.b32.xlu2 %v825_v25, %s747_s9 }
 0x140   :  { %170 = vrot.lane.b32.xlu2 %v825_v25, %s748_s10 }
 0x148   :  { %214 = vrot.lane.b32.xlu2 %v825_v25, %s736_s27 }
 0x172   :  { %v111_v31 = vpop.permute.xlu2 %110 }
 0x17a   :  { %v121_v32 = vpop.permute.xlu2 %120 }
 0x182   :  { %v135_v34 = vpop.permute.xlu2 %134 }
 0x183   :  { %v137_v58 = vmul.f32 %v135_v34, %v825_v25 }
 0x18a   :  { %v101_v37 = vpop.permute.xlu1 %100  ;;  %v193_v38 = vpop.permute.xlu2 %192 }
 0x18b   :  { %v103_v39 = vadd.f32 %v101_v37, %v93_v36  ;;  %v162_v40 = vpop.permute.xlu0 %161  ;;  %v195_v61 = vmul.f32 %v193_v38, %v825_v25 }
 0x18c   :  { %v164_v41 = vmul.f32 %v162_v40, %v825_v25 }
 0x18d   :  { %v113_v42 = vadd.f32 %v111_v31, %v103_v39 }
 0x18e   :  { %166 = vrot.lane.b32.xlu1 %v164_v41, %s745_s7 }
 0x18f   :  { %v123_v43 = vadd.f32 %v121_v32, %v113_v42 }
 0x192   :  { %v145_v44 = vpop.permute.xlu1 %144  ;;  %v180_v45 = vpop.permute.xlu2 %179 }
 0x193   :  { %v202_v46 = vpop.permute.xlu0 %201  ;;  %v182_v60 = vmul.f32 %v180_v45, %v825_v25  ;;  %v147_v16 = vmul.f32 %v145_v44, %v825_v25 }
 0x194   :  { %v204_v47 = vmul.f32 %v202_v46, %v825_v25 }
 0x196   :  { %206 = vrot.lane.b32.xlu1 %v204_v47, %s745_s7 }
 0x19a   :  { %v158_v48 = vpop.permute.xlu1 %157  ;;  %v171_v49 = vpop.permute.xlu2 %170 }
 0x19b   :  { %v173_v50 = vmul.f32 %v171_v49, %v825_v25  ;;  %v211_v51 = vpop.permute.xlu0 %210  ;;  %v160_v54 = vmul.f32 %v158_v48, %v825_v25 }
 0x19c   :  { %v213_v7 = vmul.f32 %v211_v51, %v825_v25 }
 0x19d   :  { %175 = vrot.lane.b32.xlu2 %v173_v50, %s737_s1 }
 0x1a2   :  { %v149_v52 = vpop.permute.xlu1 %148  ;;  %v215_v53 = vpop.permute.xlu2 %214 }
 0x1a3   :  { %v151_v55 = vmul.f32 %v149_v52, %v825_v25  ;;  %v217_v56 = vmul.f32 %v215_v53, %v825_v25  ;;  %v141_v57 = vpop.permute.xlu0 %140 }
 0x1a4   :  { %v869_v59 = vsub.f32 %v137_v58, %v141_v57 }
 0x1a5   :  { %224 = vrot.lane.b32.xlu2 %v160_v54, %s745_s7  ;;  %219 = vrot.lane.b32.xlu1 %v217_v56, %s745_s7 }
 0x1a6   :  { %153 = vrot.lane.b32.xlu0 %v151_v55, %s745_s7 }
 0x1aa   :  { %v189_v62 = vpop.permute.xlu1 %188 }
 0x1ab   :  { %v191_v5 = vmul.f32 %v189_v62, %v825_v25 }
 0x1ad   :  { %271 = vrot.lane.b32.xlu1 %v869_v59, %s743_s5  ;;  %229 = vrot.lane.b32.xlu2 %v869_v59, %s749_s11 }
 0x1ae   :  { %184 = vrot.lane.b32.xlu0 %v182_v60, %s737_s1 }
 0x1b5   :  { %453 = vrot.lane.b32.xlu1 %v869_v59, %s750_s12  ;;  %431 = vrot.lane.b32.xlu2 %v869_v59, %s751_s13 }
 0x1b6   :  { %197 = vrot.lane.b32.xlu0 %v195_v61, %s745_s7 }
 0x1bd   :  { %291 = vrot.lane.b32.xlu1 %v869_v59, %s746_s8 }
 0x1be   :  { %472 = vrot.lane.b32.xlu0 %v869_v59, %s752_s14 }
 0x1c6   :  { %125 = vrot.lane.b32.xlu0 %v123_v43, %s737_s1 }
 0x1f7   :  { %v176_v0 = vpop.permute.xlu2 %175 }
 0x1f8   :  { %v897_v14 = vsub.f32 %v137_v58, %v176_v0 }
 0x1fa   :  { %v265_v26 = vmul.f32 %v897_v14, %v897_v14 }
 0x1ff   :  { %v225_v4 = vpop.permute.xlu2 %224 }
 0x200   :  { %v167_v63 = vpop.permute.xlu1 %166  ;;  %v227_v6 = vsub.f32 %v191_v5, %v225_v4 }
 0x201   :  { %v893_v12 = vsub.f32 %v160_v54, %v167_v63 }
 0x207   :  { %v941_v28 = vpop.permute.xlu2 %229 }
 0x208   :  { %v207_v2 = vpop.permute.xlu1 %206  ;;  %v232_v50 = vmul.f32 %v941_v28, %v869_v59 }
 0x209   :  { %v209_v3 = vsub.f32 %v137_v58, %v207_v2 }
 0x20b   :  { %240 = vrot.lane.b32.xlu1 %v209_v3, %s740_s30 }
 0x20f   :  { %v432_v30 = vpop.permute.xlu2 %431 }
 0x210   :  { %v434_v32 = vmul.f32 %v432_v30, %v825_v25 }
 0x213   :  { %256 = vrot.lane.b32.xlu1 %v227_v6, %s745_s7 }
 0x217   :  { %v220_v8 = vpop.permute.xlu1 %219 }
 0x218   :  { %v222_v9 = vsub.f32 %v213_v7, %v220_v8  ;;  %v154_v10 = vpop.permute.xlu0 %153 }
 0x219   :  { %v913_v21 = vsub.f32 %v147_v16, %v154_v10 }
 0x21a   :  { %246 = vrot.lane.b32.xlu2 %v222_v9, %s745_s7  ;;  %v360_v27 = vmul.f32 %v222_v9, %v825_v25 }
 0x21b   :  { %304 = vrot.lane.b32.xlu1 %v209_v3, %s741_s3 }
 0x21f   :  { %v934_v24 = vpop.permute.xlu1 %271 }
 0x220   :  { %v185_v11 = vpop.permute.xlu0 %184 }
 0x221   :  { %v187_v18 = vsub.f32 %v147_v16, %v185_v11 }
 0x223   :  { %400 = vrot.lane.b32.xlu1 %v893_v12, %s752_s14 }
 0x227   :  { %v454_v29 = vpop.permute.xlu1 %453 }
 0x228   :  { %v198_v13 = vpop.permute.xlu0 %197  ;;  %v456_v35 = vmul.f32 %v454_v29, %v825_v25 }
 0x229   :  { %v899_v15 = vsub.f32 %v191_v5, %v198_v13 }
 0x22b   :  { %328 = vrot.lane.b32.xlu1 %v897_v14, %s753_s15  ;;  %295 = vrot.lane.b32.xlu2 %v899_v15, %s737_s1  ;;  %v275_v62 = vmul.f32 %v899_v15, %v825_v25 }
 0x22c   :  { %234 = vrot.lane.b32.xlu0 %v899_v15, %s740_s30  ;;  %s770_s30 = smov 105  }
 0x22f   :  { %v949_v31 = vpop.permute.xlu1 %291 }
 0x230   :  { %v907_v17 = vpop.permute.xlu0 %472 }
 0x231   :  { %v475_v16 = vmul.f32 %v907_v17, %v825_v25 }
 0x233   :  { %444 = vrot.lane.b32.xlu1 %v893_v12, %s754_s16  ;;  %319 = vrot.lane.b32.xlu2 %v187_v18, %s752_s14 }
 0x234   :  { %380 = vrot.lane.b32.xlu0 %v893_v12, %s750_s12 }
 0x238   :  { %v126_v20 = vpop.permute.xlu0 %125 }
 0x239   :  { %v128_v22 = vsub.f32 %v77_v19, %v126_v20 }
 0x23b   :  { %v916_v23 = vadd.f32 %v854_v33, %v128_v22  ;;  %390 = vrot.lane.b32.xlu2 %v913_v21, %s751_s13 }
 0x23c   :  { %366 = vrot.lane.b32.xlu0 %v227_v6, %s755_s17 }
 0x23d   :  { %514 = vrot.lane.b32.xlu1 %v916_v23, %s756_s18 }
 0x243   :  { %341 = vrot.lane.b32.xlu2 %v187_v18, %s757_s0 }
 0x244   :  { %422 = vrot.lane.b32.xlu0 %v893_v12, %s758_s19 }
 0x245   :  { %482 = vrot.lane.b32.xlu1 %v916_v23, %s759_s20 }
 0x24b   :  { %463 = vrot.lane.b32.xlu2 %v913_v21, %s754_s16 }
 0x24c   :  { %409 = vrot.lane.b32.xlu0 %v913_v21, %s750_s12 }
 0x253   :  { %375 = vrot.lane.b32.xlu2 %v897_v14, %s755_s17 }
 0x254   :  { %350 = vrot.lane.b32.xlu0 %v897_v14, %s752_s14 }
 0x25b   :  { %314 = vrot.lane.b32.xlu2 %v897_v14, %s760_s21 }
 0x25c   :  { %281 = vrot.lane.b32.xlu0 %v209_v3, %s755_s17 }
 0x263   :  { %418 = vrot.lane.b32.xlu2 %v187_v18, %s747_s9 }
 0x264   :  { %267 = vrot.lane.b32.xlu0 %v265_v26, %s738_s28 }
 0x26b   :  { %337 = vrot.lane.b32.xlu2 %v897_v14, %s761_s23 }
 0x26c   :  { %362 = vrot.lane.b32.xlu0 %v360_v27, %s738_s28 }
 0x273   :  { %440 = vrot.lane.b32.xlu2 %v187_v18, %s755_s17 }
 0x274   :  { %486 = vrot.lane.b32.xlu0 %v916_v23, %s733_s22  ;;  %v247_v33 = vpop.permute.xlu2 %246  ;;  %s763_s22 = smov 21  }
 0x275   :  { %v249_v36 = vmul.f32 %v247_v33, %v897_v14 }
 0x27b   :  { %436 = vrot.lane.b32.xlu2 %v434_v32, %s739_s29 }
 0x27c   :  { %539 = vrot.lane.b32.xlu0 %v916_v23, %s762_s24 }
 0x27d   :  { %v241_v34 = vpop.permute.xlu1 %240 }
 0x27e   :  { %v243_v52 = vmul.f32 %v241_v34, %v893_v12 }
 0x283   :  { %458 = vrot.lane.b32.xlu2 %v456_v35, %s746_s8 }
 0x284   :  { %251 = vrot.lane.b32.xlu0 %v249_v36, %s745_s7 }
 0x285   :  { %v257_v37 = vpop.permute.xlu1 %256  ;;  %v296_v38 = vpop.permute.xlu2 %295 }
 0x286   :  { %v298_v39 = vmul.f32 %v296_v38, %v825_v25  ;;  %v259_v43 = vmul.f32 %v257_v37, %v187_v18 }
 0x288   :  { %300 = vrot.lane.b32.xlu1 %v298_v39, %s745_s7  ;;  %v290_v39 = vsub.f32 0.0, %v825_v25 }
 0x28b   :  { %510 = vrot.lane.b32.xlu2 %v916_v23, %s763_s22 }
 0x28d   :  { %v305_v40 = vpop.permute.xlu1 %304  ;;  %v320_v41 = vpop.permute.xlu2 %319 }
 0x28e   :  { %v307_v42 = vmul.f32 %v305_v40, %v825_v25  ;;  %v322_v63 = vmul.f32 %v320_v41, %v825_v25  ;;  %v294_v41 = vmul.f32 %v949_v31, %v290_v39 }
 0x290   :  { %309 = vrot.lane.b32.xlu0 %v307_v42, %s738_s28 }
 0x293   :  { %261 = vrot.lane.b32.xlu2 %v259_v43, %s745_s7 }
 0x295   :  { %v401_v44 = vpop.permute.xlu1 %400  ;;  %v391_v45 = vpop.permute.xlu2 %390 }
 0x296   :  { %v403_v4 = vmul.f32 %v401_v44, %v825_v25  ;;  %v393_v5 = vmul.f32 %v391_v45, %v825_v25 }
 0x29d   :  { %v329_v46 = vpop.permute.xlu1 %328  ;;  %v342_v47 = vpop.permute.xlu2 %341 }
 0x29e   :  { %v331_v48 = vmul.f32 %v329_v46, %v825_v25  ;;  %v235_v49 = vpop.permute.xlu0 %234  ;;  %v344_v8 = vmul.f32 %v342_v47, %v825_v25  ;;  %v359_v46 = vmul.f32 %v941_v28, %v825_v25 }
 0x29f   :  { %v237_v51 = vmul.f32 %v235_v49, %v913_v21 }
 0x2a0   :  { %333 = vrot.lane.b32.xlu2 %v331_v48, %s736_s27 }
 0x2a1   :  { %v238_v53 = vsub.f32 %v232_v50, %v237_v51 }
 0x2a3   :  { %v244_v54 = vadd.f32 %v243_v52, %v238_v53 }
 0x2a5   :  { %v445_v55 = vpop.permute.xlu1 %444  ;;  %v464_v56 = vpop.permute.xlu2 %463 }
 0x2a6   :  { %v447_v57 = vmul.f32 %v445_v55, %v825_v25  ;;  %v381_v58 = vpop.permute.xlu0 %380  ;;  %v466_v12 = vmul.f32 %v464_v56, %v825_v25 }
 0x2a7   :  { %v383_v60 = vmul.f32 %v381_v58, %v825_v25 }
 0x2a8   :  { %449 = vrot.lane.b32.xlu2 %v447_v57, %s737_s1 }
 0x2a9   :  { %385 = vrot.lane.b32.xlu1 %v383_v60, %s736_s27 }
 0x2ad   :  { %v974_v59 = vpop.permute.xlu2 %375 }
 0x2ae   :  { %v367_v61 = vpop.permute.xlu0 %366  ;;  %v378_v53 = vmul.f32 %v974_v59, %v290_v39 }
 0x2af   :  { %v369_v0 = vmul.f32 %v367_v61, %v825_v25  ;;  %v1009_v29 = vpop.permute.xlu1 %514 }
 0x2b0   :  { %277 = vrot.lane.b32.xlu2 %v275_v62, %s745_s7 }
 0x2b1   :  { %324 = vrot.lane.b32.xlu1 %v322_v63, %s737_s1  ;;  %371 = vrot.lane.b32.xlu0 %v369_v0, %s741_s3  ;;  %s771_s3 = smov [#allocation2]  }
 0x2b2   :  { %s632_s4 = sshll.u32 %s771_s3, 4  ;;  %s633_s4 = int_to_ptr.vmem [resolvable:$true] %s632_s4 }
 0x2b5   :  { %v315_v2 = vpop.permute.xlu2 %314 }
 0x2b6   :  { %v423_v3 = vpop.permute.xlu0 %422  ;;  %v317_v50 = vmul.f32 %v315_v2, %v825_v25 }
 0x2b7   :  { %v425_v9 = vmul.f32 %v423_v3, %v825_v25  ;;  %v1013_v33 = vpop.permute.xlu1 %482 }
 0x2b9   :  { %405 = vrot.lane.b32.xlu1 %v403_v4, %s736_s27  ;;  %395 = vrot.lane.b32.xlu0 %v393_v5, %s739_s29  ;;  %s766_s29 = smov 26  }
 0x2bd   :  { %v987_v6 = vpop.permute.xlu2 %418 }
 0x2be   :  { %v410_v7 = vpop.permute.xlu0 %409  ;;  %v421_v63 = vmul.f32 %v987_v6, %v825_v25 }
 0x2bf   :  { %v412_v13 = vmul.f32 %v410_v7, %v825_v25 }
 0x2c1   :  { %427 = vrot.lane.b32.xlu1 %v425_v9, %s737_s1  ;;  %346 = vrot.lane.b32.xlu0 %v344_v8, %s737_s1  ;;  %v399_v9 = vmul.f32 %v897_v14, %v825_v25  ;;  %v462_v14 = vmul.f32 %v974_v59, %v825_v25 }
 0x2c5   :  { %v993_v10 = vpop.permute.xlu2 %337 }
 0x2c6   :  { %v351_v11 = vpop.permute.xlu0 %350 }
 0x2c7   :  { %v353_v18 = vmul.f32 %v351_v11, %v825_v25 }
 0x2c9   :  { %414 = vrot.lane.b32.xlu1 %v412_v13, %s746_s8  ;;  %468 = vrot.lane.b32.xlu0 %v466_v12, %s737_s1 }
 0x2cd   :  { %v441_v19 = vpop.permute.xlu2 %440 }
 0x2ce   :  { %v282_v15 = vpop.permute.xlu0 %281  ;;  %v443_v5 = vmul.f32 %v441_v19, %v290_v39 }
 0x2cf   :  { %v284_v21 = vmul.f32 %v282_v15, %v825_v25 }
 0x2d1   :  { %355 = vrot.lane.b32.xlu1 %v353_v18, %s743_s5  ;;  %477 = vrot.lane.b32.xlu0 %v475_v16, %s736_s27  ;;  %s768_s27 = smov 108  }
 0x2d5   :  { %v437_v22 = vpop.permute.xlu2 %436 }
 0x2d6   :  { %v268_v20 = vpop.permute.xlu0 %267 }
 0x2d9   :  { %501 = vrot.lane.b32.xlu1 %v916_v23, %s764_s25  ;;  %286 = vrot.lane.b32.xlu0 %v284_v21, %s738_s28  ;;  %v340_v21 = vmul.f32 %v993_v10, %v290_v39 }
 0x2dd   :  { %v459_v17 = vpop.permute.xlu2 %458 }
 0x2de   :  { %v363_v26 = vpop.permute.xlu0 %362 }
 0x2df   :  { %v365_v47 = vsub.f32 %v359_v46, %v363_v26 }
 0x2e1   :  { %535 = vrot.lane.b32.xlu1 %v916_v23, %s765_s26 }
 0x2e5   :  { %v1011_v30 = vpop.permute.xlu2 %510 }
 0x2e6   :  { %v487_v27 = vpop.permute.xlu0 %486 }
 0x2e9   :  { %560 = vrot.lane.b32.xlu1 %v916_v23, %s766_s29 }
 0x2ed   :  { %v262_v36 = vpop.permute.xlu2 %261 }
 0x2ee   :  { %v540_v32 = vpop.permute.xlu0 %539 }
 0x2f6   :  { %v252_v34 = vpop.permute.xlu0 %251 }
 0x2f7   :  { %v254_v35 = vadd.f32 %v252_v34, %v244_v54 }
 0x2f9   :  { %v264_v37 = vsub.f32 %v254_v35, %v262_v36 }
 0x2fa   :  { %v301_v40 = vpop.permute.xlu1 %300  ;;  %v334_v54 = vpop.permute.xlu2 %333 }
 0x2fb   :  { %v1015_v38 = vadd.f32 %v268_v20, %v264_v37  ;;  %v303_v42 = vadd.f32 %v301_v40, %v294_v41  ;;  %v767_v40 = vmov 20  }
 0x2fc   :  { %696 = vset.pattern.permute.xlu1 %v767_v40  ;;  %697 = vset.pattern.permute.xlu0 %v767_v40 }
 0x2fd   :  { %703 = vrcp.f32 %v1015_v38 }
 0x302   :  { %v310_v23 = vpop.permute.xlu0 %309  ;;  %v450_v4 = vpop.permute.xlu2 %449 }
 0x303   :  { %v1019_v43 = vsub.f32 %v303_v42, %v310_v23  ;;  %v452_v8 = vadd.f32 %v450_v4, %v443_v5 }
 0x305   :  { %v489_v44 = vmul.f32 %v487_v27, %v1019_v43  ;;  %v461_v15 = vsub.f32 %v452_v8, %v459_v17 }
 0x307   :  { %491 = vrot.lane.b32.xlu2 %v489_v44, %s761_s23  ;;  %v570_v20 = vmul.f32 %v487_v27, %v461_v15  ;;  %v554_v59 = vmul.f32 %v1009_v29, %v461_v15 }
 0x30a   :  { %v278_v10 = vpop.permute.xlu2 %277 }
 0x31b   :  { %v386_v45 = vpop.permute.xlu1 %385 }
 0x31c   :  { %v388_v55 = vadd.f32 %v386_v45, %v378_v53 }
 0x323   :  { %v325_v48 = vpop.permute.xlu1 %324  ;;  %v372_v49 = vpop.permute.xlu0 %371 }
 0x324   :  { %v374_v51 = vadd.f32 %v372_v49, %v365_v47  ;;  %v327_v52 = vsub.f32 %v317_v50, %v325_v48  ;;  %v513_v47 = vmul.f32 %v1011_v30, %v1019_v43 }
 0x326   :  { %v517_v31 = vmul.f32 %v1009_v29, %v374_v51  ;;  %v1029_v56 = vadd.f32 %v334_v54, %v327_v52 }
 0x328   :  { %519 = vrot.lane.b32.xlu0 %v517_v31, %s755_s17  ;;  %v495_v62 = vmul.f32 %v1013_v33, %v1029_v56 }
 0x32b   :  { %v406_v57 = vpop.permute.xlu1 %405  ;;  %v396_v58 = vpop.permute.xlu0 %395 }
 0x32c   :  { %v398_v28 = vsub.f32 %v388_v55, %v396_v58  ;;  %v408_v12 = vsub.f32 %v399_v9, %v406_v57  ;;  %v274_v57 = vmul.f32 %v934_v24, %v825_v25 }
 0x32e   :  { %v523_v60 = vmul.f32 %v1011_v30, %v398_v28  ;;  %v542_v61 = vmul.f32 %v540_v32, %v398_v28  ;;  %v280_v58 = vsub.f32 %v274_v57, %v278_v10 }
 0x330   :  { %497 = vrot.lane.b32.xlu0 %v495_v62, %s738_s28  ;;  %544 = vrot.lane.b32.xlu2 %v542_v61, %s761_s23 }
 0x331   :  { %525 = vrot.lane.b32.xlu1 %v523_v60, %s738_s28  ;;  %s769_s28 = smov 103  }
 0x333   :  { %v428_v0 = vpop.permute.xlu1 %427  ;;  %v347_v2 = vpop.permute.xlu0 %346 }
 0x334   :  { %v430_v3 = vsub.f32 %v421_v63, %v428_v0  ;;  %v349_v32 = vadd.f32 %v347_v2, %v340_v21 }
 0x336   :  { %v439_v7 = vadd.f32 %v437_v22, %v430_v3 }
 0x338   :  { %v548_v11 = vmul.f32 %v1011_v30, %v439_v7 }
 0x33a   :  { %550 = vrot.lane.b32.xlu0 %v548_v11, %s761_s23 }
 0x33b   :  { %v415_v13 = vpop.permute.xlu1 %414  ;;  %v469_v18 = vpop.permute.xlu0 %468 }
 0x33c   :  { %v417_v16 = vadd.f32 %v415_v13, %v408_v12  ;;  %v471_v17 = vsub.f32 %v462_v14, %v469_v18 }
 0x33e   :  { %v564_v6 = vmul.f32 %v1011_v30, %v417_v16  ;;  %v529_v22 = vmul.f32 %v1009_v29, %v417_v16 }
 0x340   :  { %566 = vrot.lane.b32.xlu2 %v564_v6, %s761_s23 }
 0x342   :  { %572 = vrot.lane.b32.xlu0 %v570_v20, %s761_s23 }
 0x343   :  { %v356_v19 = vpop.permute.xlu1 %355  ;;  %v478_v26 = vpop.permute.xlu0 %477 }
 0x344   :  { %v358_v34 = vsub.f32 %v349_v32, %v356_v19  ;;  %v480_v35 = vadd.f32 %v478_v26, %v471_v17  ;;  %v772_v19 = vmov 0.0  }
 0x346   :  { %v576_v27 = vmul.f32 %v1009_v29, %v480_v35  ;;  %v704_v29 = vpop.eup %703 }
 0x347   :  { %v583_v31 = vmul.f32 %v704_v29, %v1015_v38 }
 0x348   :  { %531 = vrot.lane.b32.xlu2 %v529_v22, %s745_s7 }
 0x349   :  { %v584_v53 = vsub.f32 2.0, %v583_v31 }
 0x34b   :  { %v502_v36 = vpop.permute.xlu1 %501  ;;  %v287_v23 = vpop.permute.xlu0 %286  ;;  %v585_v54 = vmul.f32 %v704_v29, %v584_v53 }
 0x34c   :  { %v504_v37 = vmul.f32 %v502_v36, %v358_v34  ;;  %v289_v28 = vadd.f32 %v287_v23, %v280_v58 }
 0x34e   :  { %506 = vrot.lane.b32.xlu1 %v504_v37, %s745_s7  ;;  %v485_v43 = vmul.f32 %v1013_v33, %v289_v28 }
 0x350   :  { %578 = vrot.lane.b32.xlu2 %v576_v27, %s761_s23 }
 0x353   :  { %v536_v41 = vpop.permute.xlu1 %535 }
 0x354   :  { %v538_v2 = vmul.f32 %v536_v41, %v1029_v56 }
 0x356   :  { %556 = vrot.lane.b32.xlu1 %v554_v59, %s760_s21 }
 0x35b   :  { %v561_v44 = vpop.permute.xlu1 %560 }
 0x35c   :  { %v563_v63 = vmul.f32 %v561_v44, %v358_v34 }
 0x361   :  { %v492_v39 = vpop.permute.xlu2 %491 }
 0x362   :  { %v494_v60 = vadd.f32 %v492_v39, %v485_v43 }
 0x38a   :  { %v545_v42 = vpop.permute.xlu2 %544 }
 0x38b   :  { %v547_v4 = vadd.f32 %v545_v42, %v538_v2 }
 0x39a   :  { %v567_v45 = vpop.permute.xlu2 %566  ;;  %v520_v46 = vpop.permute.xlu0 %519 }
 0x39b   :  { %v522_v48 = vadd.f32 %v520_v46, %v513_v47  ;;  %v569_v3 = vadd.f32 %v567_v45, %v563_v63 }
 0x3a2   :  { %v532_v51 = vpop.permute.xlu2 %531  ;;  %v498_v55 = vpop.permute.xlu0 %497 }
 0x3a3   :  { %v526_v49 = vpop.permute.xlu1 %525  ;;  %v500_v61 = vadd.f32 %v498_v55, %v494_v60 }
 0x3a4   :  { %v528_v50 = vadd.f32 %v526_v49, %v522_v48 }
 0x3a6   :  { %v534_v52 = vadd.f32 %v532_v51, %v528_v50 }
 0x3a8   :  { %591 = vrot.lane.b32.xlu1 %v534_v52, %s768_s27 }
 0x3aa   :  { %v579_v25 = vpop.permute.xlu2 %578 }
 0x3ac   :  { %v551_v30 = vpop.permute.xlu0 %550 }
 0x3ad   :  { %v553_v7 = vadd.f32 %v551_v30, %v547_v4 }
 0x3b0   :  { %610 = vperm.xlu1 %696, %v585_v54  }
 0x3b4   :  { %v573_v38 = vpop.permute.xlu0 %572 }
 0x3b5   :  { %v575_v5 = vadd.f32 %v573_v38, %v569_v3 }
 0x3b7   :  { %v581_v8 = vadd.f32 %v579_v25, %v575_v5 }
 0x3c0   :  { %v507_v62 = vpop.permute.xlu1 %506 }
 0x3c1   :  { %v509_v0 = vadd.f32 %v507_v62, %v500_v61 }
 0x3c3   :  { %587 = vrot.lane.b32.xlu0 %v509_v0, %s769_s28 }
 0x3c8   :  { %v557_v24 = vpop.permute.xlu1 %556 }
 0x3c9   :  { %v559_v9 = vadd.f32 %v557_v24, %v553_v7 }
 0x3cb   :  { %595 = vrot.lane.b32.xlu2 %v559_v9, %s769_s28  ;;  %599 = vrot.lane.b32.xlu0 %v581_v8, %s770_s30 }
 0x3d3   :  { %614 = vrot.lane.b32.xlu2 %v794_v1, %s737_s1 }
 0x41a   :  { %v592_v56 = vpop.permute.xlu1 %591 }
 0x422   :  { %v611_v18 = vpop.permute.xlu1 %610 }
 0x425   :  { %v596_v33 = vpop.permute.xlu2 %595 }
 0x42d   :  { %v615_v11 = vpop.permute.xlu2 %614 }
 0x42e   :  { %618 = vst.msk [vmem:[#allocation2] sm:$0xff] %vm617_vm2, %v615_v11 }
 0x435   :  { %v588_v12 = vpop.permute.xlu0 %587 }
 0x436   :  { %v603_v13 = vsel %vm602_vm3, %v588_v12, %v592_v56 }
 0x437   :  { %v605_v15 = vsel %vm604_vm4, %v603_v13, %v596_v33 }
 0x43d   :  { %v600_v16 = vpop.permute.xlu0 %599 }
 0x43e   :  { %v607_v6 = vsel %vm606_vm5, %v605_v15, %v600_v16 }
 0x43f   :  { %v613_v20 = vmul.f32 %v611_v18, %v607_v6 }
 0x441   :  { %620 = vrot.lane.b32.xlu0 %v613_v20, %s761_s23 }
 0x4b3   :  { %v621_v1 = vpop.permute.xlu0 %620 }
 0x4b4   :  { %624 = vst.msk [vmem:[#allocation2] sm:$0xff] %vm623_vm6, %v621_v1 }
 0x4b5   :  { %626 = vst.msk [vmem:[#allocation2] sm:$0xff] %vm625_vm7, %v772_v19 }
 0x4b6   :  { %637 = dma.vmem_to_hbm [thread:$0]  %s633_s4, 128, %s635_s6, [#allocation3]  }
 0x4b7   :  { %729 = dma.done.wait [#allocation3], 128  }
 0x4b8   :  { %730 = vsyncadd [#allocation3], 4294967168 }
 0x4b9   :  { %642 = vsyncpa [#allocation3], 1 }

</bundles_post_ra>
